<compile_context>
chip_gen: v5e
topology: v5e:2x2
jax: 0.10.0
libtpu: 0.0.40
codegen_flags: <defaults>
</compile_context>

<pallas_src>
import jax
import jax.numpy as jnp
from jax.experimental import pallas as pl
from jax.experimental.pallas import tpu as pltpu  # noqa: F401  (TPU backend)

# ---- static configuration (small shapes consistent with the module) ----------
BATCH = 2
SEQ = 16
HIDDEN_DIM = 256
OUT_DIM = 256


# ----------------------------- Pallas kernel ----------------------------------
def prenet_kernel(x_ref, w_ref, b_ref, keep_ref, o_ref):
    """Fused LinearNorm + masked_fill.

    x:    (N, H)  f32 activations (N = B*T)
    w:    (H, O)  bf16 weight, stored pre-transposed so kernel does x @ W
    b:    (1, O)  f32 bias
    keep: (N, 1)  f32, 1.0 = keep row, 0.0 = masked (masked_fill value 0)
    o:    (N, O)  f32
    """
    x = x_ref[...].astype(jnp.bfloat16)                    # MXU-native operands
    y = jnp.dot(x, w_ref[...], preferred_element_type=jnp.float32)
    y = y + b_ref[...]                                     # f32 vector math
    y = y * keep_ref[...]                                  # masked_fill(mask, 0)
    o_ref[...] = y.astype(o_ref.dtype)


# ----------------------------- wrapper -----------------------------------------
def prenet_forward(params, x, mask=None):
    """x: (B, T, H); mask: optional (B, T) bool (True = zero the position)."""
    B, T, H = x.shape
    O = params["w"].shape[1]
    N = B * T
    x2d = x.reshape(N, H)

    if mask is None:
        keep = jnp.ones((N, 1), jnp.float32)
    else:
        keep = (1.0 - mask.reshape(N, 1).astype(jnp.float32))

    out2d = pl.pallas_call(
        prenet_kernel,
        out_shape=jax.ShapeDtypeStruct((N, O), jnp.float32),
        grid=(1,),
        in_specs=[
            pl.BlockSpec((N, H), lambda i: (0, 0)),
            pl.BlockSpec((H, O), lambda i: (0, 0)),
            pl.BlockSpec((1, O), lambda i: (0, 0)),
            pl.BlockSpec((N, 1), lambda i: (0, 0)),
        ],
        out_specs=pl.BlockSpec((N, O), lambda i: (0, 0)),
    )(x2d, params["w"], params["b"], keep)

    return out2d.reshape(B, T, O)


# ----------------------------- parameters --------------------------------------
def init_params(key):
    kw, kb = jax.random.split(key, 2)
    # LinearNorm uses xavier_uniform_ on an nn.Linear(hidden_dim, out_dim).
    limit = (6.0 / (HIDDEN_DIM + OUT_DIM)) ** 0.5
    w_f32 = jax.random.uniform(kw, (HIDDEN_DIM, OUT_DIM), jnp.float32,
                               -limit, limit)
    b = 0.01 * jax.random.normal(kb, (1, OUT_DIM), jnp.float32)
    return {
        # bf16 weight: halves HBM weight bytes, feeds the MXU natively.
        "w": w_f32.astype(jnp.bfloat16),
        "b": b,
        # keep an f32 copy only for the host-side reference check below
        "_w_f32_ref": w_f32,
    }


# ----------------------------- main ---------------------------------------------
if __name__ == "__main__":
    key = jax.random.PRNGKey(0)
    kp, kx = jax.random.split(key, 2)
    params = init_params(kp)

    x = jax.random.normal(kx, (BATCH, SEQ, HIDDEN_DIM), jnp.float32)
    # Padding-style mask: sequence 0 full length, sequence 1 has 5 padded steps.
    lengths = jnp.array([SEQ, SEQ - 5], jnp.int32)
    mask = jnp.arange(SEQ)[None, :] >= lengths[:, None]          # (B, T) bool

    fwd = jax.jit(prenet_forward)
    out = fwd({"w": params["w"], "b": params["b"]}, x, mask)
    jax.block_until_ready(out)

    # ---- verification against a plain-JAX reference (loose tol for bf16 MXU) --
    ref = jnp.einsum("bth,ho->bto", x, params["_w_f32_ref"]) + params["b"][0]
    ref = jnp.where(mask[:, :, None], 0.0, ref)

    assert out.shape == (BATCH, SEQ, OUT_DIM), out.shape
    assert jnp.allclose(out, ref, rtol=0.0, atol=5e-2), \
        float(jnp.max(jnp.abs(out - ref)))
    # masked_fill semantics: masked positions are exactly zero.
    assert bool(jnp.all(out[1, SEQ - 5:, :] == 0.0))

    print("KERNEL_OK")
</pallas_src>

<mosaic_0001>
module attributes {stable_mosaic.version = 11 : i64} {
  func.func @prenet_kernel(%arg0: i32, %arg1: memref<32x256xf32, #tpu.memory_space<vmem>>, %arg2: memref<256x256xbf16, #tpu.memory_space<vmem>>, %arg3: memref<1x256xf32, #tpu.memory_space<vmem>>, %arg4: memref<32x1xf32, #tpu.memory_space<vmem>>, %arg5: memref<32x256xf32, #tpu.memory_space<vmem>>) attributes {dimension_semantics = [#tpu.dimension_semantics<arbitrary>], iteration_bounds = array<i64: 1>, scalar_prefetch = 0 : i64, scratch_operands = 0 : i64, tpu.core_type = #tpu.core_type<tc>, window_params = [{pipeline_mode = #tpu.pipeline_mode<synchronous>, transform_indices = @transform_0, window_bounds = array<i64: 32, 256>}, {pipeline_mode = #tpu.pipeline_mode<synchronous>, transform_indices = @transform_1, window_bounds = array<i64: 256, 256>}, {pipeline_mode = #tpu.pipeline_mode<synchronous>, transform_indices = @transform_2, window_bounds = array<i64: 1, 256>}, {pipeline_mode = #tpu.pipeline_mode<synchronous>, transform_indices = @transform_3, window_bounds = array<i64: 32, 1>}, {pipeline_mode = #tpu.pipeline_mode<synchronous>, transform_indices = @transform_4, window_bounds = array<i64: 32, 256>}]} {
    %c0 = arith.constant 0 : index
    %c0_0 = arith.constant 0 : index
    %0 = vector.load %arg1[%c0, %c0_0] : memref<32x256xf32, #tpu.memory_space<vmem>>, vector<32x256xf32>
    %1 = arith.truncf %0 : vector<32x256xf32> to vector<32x256xbf16>
    %c0_1 = arith.constant 0 : index
    %c0_2 = arith.constant 0 : index
    %2 = vector.load %arg2[%c0_1, %c0_2] : memref<256x256xbf16, #tpu.memory_space<vmem>>, vector<256x256xbf16>
    %cst = arith.constant dense<0.000000e+00> : vector<32x256xf32>
    %3 = tpu.matmul %1, %2, %cst {dimension_numbers = #tpu.dot_dimension_numbers<[1], [0], [0], [1], [0, 0, 1, 1], [], []>} : vector<32x256xbf16>, vector<256x256xbf16>, vector<32x256xf32> -> vector<32x256xf32>
    %c0_3 = arith.constant 0 : index
    %c0_4 = arith.constant 0 : index
    %4 = vector.load %arg3[%c0_3, %c0_4] : memref<1x256xf32, #tpu.memory_space<vmem>>, vector<1x256xf32>
    %5 = vector.broadcast %4 : vector<1x256xf32> to vector<32x256xf32>
    %6 = arith.addf %3, %5 : vector<32x256xf32>
    %c0_5 = arith.constant 0 : index
    %c0_6 = arith.constant 0 : index
    %7 = vector.load %arg4[%c0_5, %c0_6] : memref<32x1xf32, #tpu.memory_space<vmem>>, vector<32x1xf32>
    %8 = vector.broadcast %7 : vector<32x1xf32> to vector<32x256xf32>
    %9 = arith.mulf %6, %8 : vector<32x256xf32>
    %c0_7 = arith.constant 0 : index
    %c0_8 = arith.constant 0 : index
    %10 = vector.load %arg5[%c0_7, %c0_8] : memref<32x256xf32, #tpu.memory_space<vmem>>, vector<32x256xf32>
    tpu.vector_store %arg5[%c0_7, %c0_8], %9 {strides = array<i32>} : memref<32x256xf32, #tpu.memory_space<vmem>>, vector<32x256xf32>,
    return
  }
  func.func @transform_0(%arg0: i32) -> (i32, i32) {
    %c0_i32 = arith.constant 0 : i32
    %c0_i32_0 = arith.constant 0 : i32
    %c0_i32_1 = arith.constant 0 : i32
    return %c0_i32, %c0_i32_0 : i32, i32
  }
  func.func @transform_1(%arg0: i32) -> (i32, i32) {
    %c0_i32 = arith.constant 0 : i32
    %c0_i32_0 = arith.constant 0 : i32
    %c0_i32_1 = arith.constant 0 : i32
    return %c0_i32, %c0_i32_0 : i32, i32
  }
  func.func @transform_2(%arg0: i32) -> (i32, i32) {
    %c0_i32 = arith.constant 0 : i32
    %c0_i32_0 = arith.constant 0 : i32
    %c0_i32_1 = arith.constant 0 : i32
    return %c0_i32, %c0_i32_0 : i32, i32
  }
  func.func @transform_3(%arg0: i32) -> (i32, i32) {
    %c0_i32 = arith.constant 0 : i32
    %c0_i32_0 = arith.constant 0 : i32
    %c0_i32_1 = arith.constant 0 : i32
    return %c0_i32, %c0_i32_0 : i32, i32
  }
  func.func @transform_4(%arg0: i32) -> (i32, i32) {
    %c0_i32 = arith.constant 0 : i32
    %c0_i32_0 = arith.constant 0 : i32
    %c0_i32_1 = arith.constant 0 : i32
    return %c0_i32, %c0_i32_0 : i32, i32
  }
}

</mosaic_0001>

<bundles_post_ra>
// kernel: prenet_forward.1
= control target key start
LH: loop header
LB: loop body
LE: loop exit
PB: predicated region body
PF: predicated region fallthrough
CT: control target
= control target key end

     0   :  { %9 = vsyncpa [#allocation3], 0  ;;  %s707_s0 = inlined_call_operand.hbm [shape: f32[32,256], index: 0, kind: input, shape index: {}]   ;;  %s708_s1 = inlined_call_operand.hbm [shape: bf16[256,256], index: 1, kind: input, shape index: {}]   ;;  %s709_s2 = inlined_call_operand.vmem [shape: f32[1,256], index: 2, kind: input, shape index: {}]   ;;  %s710_s3 = inlined_call_operand.vmem [shape: f32[32,1], index: 3, kind: input, shape index: {}]   ;;  %s711_s4 = inlined_call_operand.hbm [shape: f32[32,256], index: 4, kind: output, shape index: {}]  }
   0x1   :  { %10 = vsyncpa [#allocation6], 0 }
   0x2   :  { %11 = vsyncpa [#allocation4], 0  ;;  %s16_s17 = sshll.u32 %s707_s0, 4  ;;  %s644_s18 = smov [#allocation2]   ;;  %s17_s17 = int_to_ptr.hbm [resolvable:$true] %s16_s17 }
   0x3   :  { %s18_s19 = sshll.u32 %s644_s18, 4  ;;  %s29_s22 = sshll.u32 %s708_s1, 4  ;;  %s19_s19 = int_to_ptr.vmem [resolvable:$true] %s18_s19  ;;  %s30_s22 = int_to_ptr.hbm [resolvable:$true] %s29_s22 }
   0x4   :  { %s645_s23 = smov 256   ;;  %s646_s24 = smov 16  }
   0x5   :  { %24 = dma.hbm_to_vmem [thread:$0]  %s17_s17, 1024, %s19_s19, [#allocation3], %s645_s23, %s645_s23, %s646_s24  }
   0x6   :  { %s647_s25 = smov [#allocation5]   ;;  %s648_s27 = smov 128  }
   0x7   :  { %s31_s26 = sshll.u32 %s647_s25, 4  ;;  %s649_s0 = smov 8   ;;  %s32_s26 = int_to_ptr.vmem [resolvable:$true] %s31_s26 }
   0x8   :  { %37 = dma.hbm_to_vmem [thread:$0]  %s30_s22, 4096, %s32_s26, [#allocation6], %s648_s27, %s648_s27, %s649_s0  }
   0x9   :  { %638 = dma.done.wait [#allocation3], 1024  }
   0xa   :  { %639 = vsyncadd [#allocation3], 4294966272 }
   0xb   :  { %640 = dma.done.wait [#allocation6], 4096  }
   0xc   :  { %641 = vsyncadd [#allocation6], 4294963200  ;;  %v454_v0 = vld [vmem:[#allocation5 + $0x70] sm:$0xf]  ;;  %v539_v1 = vld [vmem:[#allocation5 + $0x74] sm:$0xf0] }
   0xd   :  { %v518_v2 = vld [vmem:[#allocation5 + $0xf0] sm:$0xf]  ;;  %v455_v3 = vor.u32 %v539_v1, %v454_v0  ;;  %v555_v4 = vld [vmem:[#allocation5 + $0xf4] sm:$0xf0]  ;;  %v538_v5 = vld [vmem:[#allocation5 + $0x74] sm:$0xf] }
   0xe   :  { %v456_v6 = vld [vmem:[#allocation5 + $0x78] sm:$0xf0]  ;;  %v519_v7 = vor.u32 %v555_v4, %v518_v2  ;;  %v554_v9 = vld [vmem:[#allocation5 + $0xf4] sm:$0xf]  ;;  %v446_v11 = vld [vmem:[#allocation5 + $0x60] sm:$0xf] }
   0xf   :  { %v459_v8 = vor.u32 %v538_v5, %v456_v6  ;;  %v520_v10 = vld [vmem:[#allocation5 + $0xf8] sm:$0xf0]  ;;  %260 = vmatpush.bf16.msra.mxu0 %v455_v3  ;;  %v537_v13 = vld [vmem:[#allocation5 + $0x64] sm:$0xf0]  ;;  %v510_v14 = vld [vmem:[#allocation5 + $0xe0] sm:$0xf] }
  0x10   :  { %v523_v12 = vor.u32 %v554_v9, %v520_v10  ;;  %v553_v15 = vld [vmem:[#allocation5 + $0xe4] sm:$0xf0]  ;;  %279 = vmatpush.bf16.msra.mxu1 %v519_v7  ;;  %v447_v16 = vor.u32 %v537_v13, %v446_v11  ;;  %v536_v18 = vld [vmem:[#allocation5 + $0x64] sm:$0xf]  ;;  %v448_v19 = vld [vmem:[#allocation5 + $0x68] sm:$0xf0] }
  0x11   :  { %298 = vmatpush.bf16.msra.mxu2 %v459_v8  ;;  %v511_v17 = vor.u32 %v553_v15, %v510_v14  ;;  %v552_v20 = vld [vmem:[#allocation5 + $0xe4] sm:$0xf]  ;;  %v451_v21 = vor.u32 %v536_v18, %v448_v19  ;;  %v512_v22 = vld [vmem:[#allocation5 + $0xe8] sm:$0xf0]  ;;  %v438_v23 = vld [vmem:[#allocation5 + $0x50] sm:$0xf] }
  0x12   :  { %317 = vmatpush.bf16.msra.mxu3 %v523_v12  ;;  %v535_v24 = vld [vmem:[#allocation5 + $0x54] sm:$0xf0]  ;;  %v515_v25 = vor.u32 %v552_v20, %v512_v22  ;;  %v502_v26 = vld [vmem:[#allocation5 + $0xd0] sm:$0xf]  ;;  %v534_v28 = vld [vmem:[#allocation5 + $0x54] sm:$0xf] }
  0x13   :  { %v551_v27 = vld [vmem:[#allocation5 + $0xd4] sm:$0xf0]  ;;  %261 = vmatpush.bf16.msra.mxu0 %v447_v16  ;;  %v439_v29 = vor.u32 %v535_v24, %v438_v23  ;;  %v440_v30 = vld [vmem:[#allocation5 + $0x58] sm:$0xf0]  ;;  %v550_v31 = vld [vmem:[#allocation5 + $0xd4] sm:$0xf] }
  0x14   :  { %v504_v32 = vld [vmem:[#allocation5 + $0xd8] sm:$0xf0]  ;;  %280 = vmatpush.bf16.msra.mxu1 %v511_v17  ;;  %v503_v33 = vor.u32 %v551_v27, %v502_v26  ;;  %v443_v34 = vor.u32 %v534_v28, %v440_v30  ;;  %v430_v35 = vld [vmem:[#allocation5 + $0x40] sm:$0xf]  ;;  %v533_v36 = vld [vmem:[#allocation5 + $0x44] sm:$0xf0] }
  0x15   :  { %299 = vmatpush.bf16.msra.mxu2 %v451_v21  ;;  %v494_v37 = vld [vmem:[#allocation5 + $0xc0] sm:$0xf]  ;;  %v507_v38 = vor.u32 %v550_v31, %v504_v32  ;;  %v549_v39 = vld [vmem:[#allocation5 + $0xc4] sm:$0xf0]  ;;  %v532_v40 = vld [vmem:[#allocation5 + $0x44] sm:$0xf]  ;;  %v431_v44 = vor.u32 %v533_v36, %v430_v35 }
  0x16   :  { %318 = vmatpush.bf16.msra.mxu3 %v515_v25  ;;  %v432_v41 = vld [vmem:[#allocation5 + $0x48] sm:$0xf0]  ;;  %v548_v42 = vld [vmem:[#allocation5 + $0xc4] sm:$0xf]  ;;  %v495_v45 = vor.u32 %v549_v39, %v494_v37  ;;  %v422_v47 = vld [vmem:[#allocation5 + $0x30] sm:$0xf] }
  0x17   :  { %v496_v43 = vld [vmem:[#allocation5 + $0xc8] sm:$0xf0]  ;;  %262 = vmatpush.bf16.msra.mxu0 %v439_v29  ;;  %v435_v46 = vor.u32 %v532_v40, %v432_v41  ;;  %v531_v48 = vld [vmem:[#allocation5 + $0x34] sm:$0xf0]  ;;  %v486_v49 = vld [vmem:[#allocation5 + $0xb0] sm:$0xf] }
  0x18   :  { %281 = vmatpush.bf16.msra.mxu1 %v503_v33  ;;  %v499_v50 = vor.u32 %v548_v42, %v496_v43  ;;  %v547_v51 = vld [vmem:[#allocation5 + $0xb4] sm:$0xf0]  ;;  %v530_v52 = vld [vmem:[#allocation5 + $0x34] sm:$0xf]  ;;  %v424_v53 = vld [vmem:[#allocation5 + $0x38] sm:$0xf0]  ;;  %v423_v56 = vor.u32 %v531_v48, %v422_v47 }
  0x19   :  { %300 = vmatpush.bf16.msra.mxu2 %v443_v34  ;;  %v546_v54 = vld [vmem:[#allocation5 + $0xb4] sm:$0xf]  ;;  %v488_v55 = vld [vmem:[#allocation5 + $0xb8] sm:$0xf0]  ;;  %v487_v57 = vor.u32 %v547_v51, %v486_v49  ;;  %v427_v58 = vor.u32 %v530_v52, %v424_v53  ;;  %v414_v59 = vld [vmem:[#allocation5 + $0x20] sm:$0xf] }
  0x1a   :  { %319 = vmatpush.bf16.msra.mxu3 %v507_v38  ;;  %v529_v60 = vld [vmem:[#allocation5 + $0x24] sm:$0xf0]  ;;  %v478_v61 = vld [vmem:[#allocation5 + $0xa0] sm:$0xf]  ;;  %v491_v62 = vor.u32 %v546_v54, %v488_v55  ;;  %v528_v0 = vld [vmem:[#allocation5 + $0x24] sm:$0xf] }
  0x1b   :  { %263 = vmatpush.bf16.msra.mxu0 %v431_v44  ;;  %v545_v63 = vld [vmem:[#allocation5 + $0xa4] sm:$0xf0]  ;;  %v416_v1 = vld [vmem:[#allocation5 + $0x28] sm:$0xf0]  ;;  %v544_v2 = vld [vmem:[#allocation5 + $0xa4] sm:$0xf]  ;;  %v415_v4 = vor.u32 %v529_v60, %v414_v59 }
  0x1c   :  { %282 = vmatpush.bf16.msra.mxu1 %v495_v45  ;;  %v480_v3 = vld [vmem:[#allocation5 + $0xa8] sm:$0xf0]  ;;  %v406_v5 = vld [vmem:[#allocation5 + $0x10] sm:$0xf]  ;;  %v479_v6 = vor.u32 %v545_v63, %v478_v61  ;;  %v419_v7 = vor.u32 %v528_v0, %v416_v1  ;;  %v527_v8 = vld [vmem:[#allocation5 + $0x14] sm:$0xf0] }
  0x1d   :  { %301 = vmatpush.bf16.msra.mxu2 %v435_v46  ;;  %v470_v9 = vld [vmem:[#allocation5 + $0x90] sm:$0xf]  ;;  %v543_v10 = vld [vmem:[#allocation5 + $0x94] sm:$0xf0]  ;;  %v483_v11 = vor.u32 %v544_v2, %v480_v3  ;;  %v526_v12 = vld [vmem:[#allocation5 + $0x14] sm:$0xf]  ;;  %v407_v18 = vor.u32 %v527_v8, %v406_v5 }
  0x1e   :  { %320 = vmatpush.bf16.msra.mxu3 %v499_v50  ;;  %v408_v13 = vld [vmem:[#allocation5 + $0x18] sm:$0xf0]  ;;  %v542_v14 = vld [vmem:[#allocation5 + $0x94] sm:$0xf]  ;;  %v650_v16 = vmov 0   ;;  %v336_v17 = vld [vmem:[%s710_s3] sm:$0xff]  ;;  %v471_v20 = vor.u32 %v543_v10, %v470_v9 }
  0x1f   :  { %264 = vmatpush.bf16.msra.mxu0 %v423_v56  ;;  %v472_v15 = vld [vmem:[#allocation5 + $0x98] sm:$0xf0]  ;;  %564 = vset.pattern.permute.xlu0 %v650_v16  ;;  %v398_v19 = vld [vmem:[#allocation5] sm:$0xf]  ;;  %v411_v21 = vor.u32 %v526_v12, %v408_v13  ;;  %v525_v22 = vld [vmem:[#allocation5 + $0x4] sm:$0xf0] }
  0x20   :  { %283 = vmatpush.bf16.msra.mxu1 %v487_v57  ;;  %565 = vset.pattern.permute.xlu1 %v650_v16  ;;  %v462_v23 = vld [vmem:[#allocation5 + $0x80] sm:$0xf]  ;;  %v338_v24 = vld [vmem:[%s710_s3 + $0x10] sm:$0xff]  ;;  %v475_v25 = vor.u32 %v542_v14, %v472_v15  ;;  %v541_v26 = vld [vmem:[#allocation5 + $0x84] sm:$0xf0]  ;;  %v399_v31 = vor.u32 %v525_v22, %v398_v19  ;;  %s382_s13 = sshll.u32 %s711_s4, 4  ;;  %s383_s13 = int_to_ptr.hbm [resolvable:$true] %s382_s13 }
  0x21   :  { %302 = vmatpush.bf16.msra.mxu2 %v427_v58  ;;  %342 = vperm.xlu0 %564, %v336_v17   ;;  %v524_v27 = vld [vmem:[#allocation5 + $0x4] sm:$0xf]  ;;  %v400_v28 = vld [vmem:[#allocation5 + $0x8] sm:$0xf0]  ;;  %v52_v33 = vld [vmem:[#allocation2 + $0x10] sm:$0xff]  ;;  %v463_v34 = vor.u32 %v541_v26, %v462_v23 }
  0x22   :  { %321 = vmatpush.bf16.msra.mxu3 %v491_v62  ;;  %352 = vperm.xlu1 %565, %v338_v24   ;;  %v540_v29 = vld [vmem:[#allocation5 + $0x84] sm:$0xf]  ;;  %v464_v30 = vld [vmem:[#allocation5 + $0x88] sm:$0xf0]  ;;  %v403_v35 = vor.u32 %v524_v27, %v400_v28  ;;  %v53_v37 = vld [vmem:[#allocation2 + $0x18] sm:$0xff] }
  0x23   :  { %265 = vmatpush.bf16.msra.mxu0 %v415_v4  ;;  %v50_v32 = vld [vmem:[#allocation2] sm:$0xff]  ;;  %v51_v36 = vld [vmem:[#allocation2 + $0x8] sm:$0xff]  ;;  %v467_v39 = vor.u32 %v540_v29, %v464_v30  ;;  %v339_v41 = vld [vmem:[%s710_s3 + $0x18] sm:$0xff] }
  0x24   :  { %284 = vmatpush.bf16.msra.mxu1 %v479_v6  ;;  %v337_v38 = vld [vmem:[%s710_s3 + $0x8] sm:$0xff]  ;;  %v58_v40 = vpack.c.bf16 %v52_v33, %v50_v32  ;;  %v59_v42 = vpack.c.bf16 %v53_v37, %v51_v36  ;;  %v54_v43 = vld [vmem:[#allocation2 + $0x20] sm:$0xff]  ;;  %v56_v44 = vld [vmem:[#allocation2 + $0x30] sm:$0xff] }
  0x25   :  { %303 = vmatpush.bf16.msra.mxu2 %v419_v7  ;;  %v55_v45 = vld [vmem:[#allocation2 + $0x28] sm:$0xff]  ;;  %v57_v46 = vld [vmem:[#allocation2 + $0x38] sm:$0xff]  ;;  %v60_v47 = vpack.c.bf16 %v56_v44, %v54_v43  ;;  %v94_v49 = vld [vmem:[%s709_s2] sm:$0x3]  ;;  %s651_s2 = smov [#allocation7]  }
  0x26   :  { %322 = vmatpush.bf16.msra.mxu3 %v483_v11  ;;  %v61_v48 = vpack.c.bf16 %v57_v46, %v55_v45  ;;  %v96_v50 = vperm.slane %v94_v49, 0  ;;  %v97_v56 = vperm.slane %v94_v49, 1  ;;  %s380_s10 = sshll.u32 %s651_s2, 4  ;;  %s381_s10 = int_to_ptr.vmem [resolvable:$true] %s380_s10 }
  0x27   :  { %266 = vmatpush.bf16.msra.mxu0 %v407_v18 }
  0x28   :  { %285 = vmatpush.bf16.msra.mxu1 %v471_v20 }
  0x29   :  { %304 = vmatpush.bf16.msra.mxu2 %v411_v21  ;;  %347 = vperm.xlu0 %564, %v337_v38  }
  0x2a   :  { %323 = vmatpush.bf16.msra.mxu3 %v475_v25  ;;  %357 = vperm.xlu1 %565, %v339_v41  }
  0x2b   :  { %267 = vmatpush.bf16.msra.mxu0 %v399_v31 }
  0x2c   :  { %286 = vmatpush.bf16.msra.mxu1 %v463_v34 }
  0x2d   :  { %305 = vmatpush.bf16.msra.mxu2 %v403_v35 }
  0x2e   :  { %324 = vmatpush.bf16.msra.mxu3 %v467_v39  ;;  %268 = vmatmul.bf16.vlgmr.msra.gmra.mxu0 %v58_v40 }
  0x2f   :  { %287 = vmatmul.bf16.vlgmr.msra.gmra.mxu1 %v59_v42 }
  0x30   :  { %306 = vmatmul.bf16.vlgmr.msra.gmra.mxu2 %v58_v40 }
  0x31   :  { %325 = vmatmul.bf16.vlgmr.msra.gmra.mxu3 %v59_v42 }
  0x3e   :  { %273 = vmatmul.bf16.gmra.mxu0 %v60_v47 }
  0x3f   :  { %292 = vmatmul.bf16.gmra.mxu1 %v61_v48 }
  0x40   :  { %311 = vmatmul.bf16.gmra.mxu2 %v60_v47 }
  0x41   :  { %330 = vmatmul.bf16.gmra.mxu3 %v61_v48 }
  0x93   :  { %v343_v52 = vpop.permute.xlu0 %342 }
  0x94   :  { %v353_v12 = vpop.permute.xlu1 %352 }
  0x9b   :  { %v348_v1 = vpop.permute.xlu0 %347 }
  0x9c   :  { %v358_v25 = vpop.permute.xlu1 %357 }
  0xab   :  { %v269_v51 = vpop.f32.mrf.mxu0 }
  0xac   :  { %v270_v53 = vadd.f32 %v269_v51, %v96_v50  ;;  %v288_v54 = vpop.f32.mrf.mxu1 }
  0xae   :  { %v289_v55 = vadd.f32 %v288_v54, %v270_v53 }
  0xb0   :  { %v360_v57 = vmul.f32 %v343_v52, %v289_v55 }
  0xb2   :  { %368 = vst [vmem:[#allocation7] sm:$0xff] %v360_v57 }
  0xb3   :  { %v307_v58 = vpop.f32.mrf.mxu2  ;;  %v271_v61 = vpop.f32.mrf.mxu0 }
  0xb4   :  { %v308_v59 = vadd.f32 %v307_v58, %v97_v56  ;;  %v326_v60 = vpop.f32.mrf.mxu3  ;;  %v272_v62 = vadd.f32 %v271_v61, %v96_v50  ;;  %v290_v63 = vpop.f32.mrf.mxu1 }
  0xb6   :  { %v327_v0 = vadd.f32 %v326_v60, %v308_v59  ;;  %v291_v2 = vadd.f32 %v290_v63, %v272_v62 }
  0xb8   :  { %v361_v3 = vmul.f32 %v343_v52, %v327_v0  ;;  %v362_v4 = vmul.f32 %v348_v1, %v291_v2 }
  0xba   :  { %369 = vst [vmem:[#allocation7 + $0x8] sm:$0xff] %v361_v3 }
  0xbb   :  { %370 = vst [vmem:[#allocation7 + $0x10] sm:$0xff] %v362_v4  ;;  %v309_v5 = vpop.f32.mrf.mxu2  ;;  %v274_v8 = vpop.f32.mrf.mxu0 }
  0xbc   :  { %v310_v6 = vadd.f32 %v309_v5, %v97_v56  ;;  %v328_v7 = vpop.f32.mrf.mxu3  ;;  %v275_v9 = vadd.f32 %v274_v8, %v96_v50  ;;  %v293_v10 = vpop.f32.mrf.mxu1 }
  0xbe   :  { %v329_v11 = vadd.f32 %v328_v7, %v310_v6  ;;  %v294_v13 = vadd.f32 %v293_v10, %v275_v9 }
  0xc0   :  { %v363_v14 = vmul.f32 %v348_v1, %v329_v11  ;;  %v364_v15 = vmul.f32 %v353_v12, %v294_v13 }
  0xc2   :  { %371 = vst [vmem:[#allocation7 + $0x18] sm:$0xff] %v363_v14 }
  0xc3   :  { %372 = vst [vmem:[#allocation7 + $0x20] sm:$0xff] %v364_v15  ;;  %v312_v16 = vpop.f32.mrf.mxu2  ;;  %v276_v19 = vpop.f32.mrf.mxu0 }
  0xc4   :  { %v313_v17 = vadd.f32 %v312_v16, %v97_v56  ;;  %v331_v18 = vpop.f32.mrf.mxu3  ;;  %v277_v20 = vadd.f32 %v276_v19, %v96_v50  ;;  %v295_v22 = vpop.f32.mrf.mxu1 }
  0xc6   :  { %v332_v21 = vadd.f32 %v331_v18, %v313_v17  ;;  %v296_v23 = vadd.f32 %v295_v22, %v277_v20 }
  0xc8   :  { %v365_v24 = vmul.f32 %v353_v12, %v332_v21  ;;  %v366_v26 = vmul.f32 %v358_v25, %v296_v23 }
  0xca   :  { %373 = vst [vmem:[#allocation7 + $0x28] sm:$0xff] %v365_v24 }
  0xcb   :  { %374 = vst [vmem:[#allocation7 + $0x30] sm:$0xff] %v366_v26  ;;  %v314_v27 = vpop.f32.mrf.mxu2 }
  0xcc   :  { %v315_v28 = vadd.f32 %v314_v27, %v97_v56  ;;  %v333_v29 = vpop.f32.mrf.mxu3 }
  0xce   :  { %v334_v30 = vadd.f32 %v333_v29, %v315_v28 }
  0xd0   :  { %v367_v31 = vmul.f32 %v358_v25, %v334_v30 }
  0xd2   :  { %375 = vst [vmem:[#allocation7 + $0x38] sm:$0xff] %v367_v31 }
  0xd3   :  { %388 = dma.vmem_to_hbm [thread:$0]  %s381_s10, 1024, %s383_s13, [#allocation4], %s645_s23, %s645_s23, %s646_s24  }
  0xd4   :  { %642 = dma.done.wait [#allocation4], 1024  }
  0xd5   :  { %643 = vsyncadd [#allocation4], 4294966272 }
  0xd6   :  { %393 = vsyncpa [#allocation3], 1 }
  0xd7   :  { %394 = vsyncpa [#allocation6], 1 }
  0xd8   :  { %395 = vsyncpa [#allocation4], 1 }

</bundles_post_ra>
